<compile_context>
chip_gen: v6e
topology: v6e:2x2x1
jax: 0.10.0
libtpu: 0.0.40
codegen_flags: <defaults>
</compile_context>

<pallas_src>
import math

import jax
import jax.numpy as jnp
from jax.experimental import pallas as pl
from jax.experimental.pallas import tpu as pltpu

EPS = 1e-12

# VMEM budgeting: keep double-buffered blocks well under the scoped-VMEM limit
# we request (32 MiB), which fits every generation's physical VMEM (v7x: 64 MiB).
_VMEM_LIMIT_BYTES = 32 * 1024 * 1024
_BLOCK_BUDGET_BYTES = 20 * 1024 * 1024


def _make_pe_table(embed_dim: int, max_seq_length: int, dtype=jnp.float32) -> jnp.ndarray:
    """Deterministic sin/cos positional-encoding table, shape (max_seq_length, embed_dim)."""
    pos = jnp.arange(max_seq_length, dtype=jnp.float32)[:, None]            # (L, 1)
    div_term = jnp.exp(
        jnp.arange(0, embed_dim, 2, dtype=jnp.float32)
        * (-math.log(10000.0) / embed_dim)
    )                                                                        # (D/2,)
    angles = pos * div_term                                                  # (L, D/2)
    pe = jnp.zeros((max_seq_length, embed_dim), dtype=jnp.float32)
    pe = pe.at[:, 0::2].set(jnp.sin(angles))
    pe = pe.at[:, 1::2].set(jnp.cos(angles))
    return pe.astype(dtype)


# ----------------------- Pallas kernels -----------------------

def _pe_nomask_kernel(x_ref, pe_ref, o_ref):
    # x_ref / o_ref: (Bt, R, L);  pe_ref: (1, R, L)  (lane-dense blocks).
    x = x_ref[...].astype(jnp.float32)
    pe = pe_ref[...].astype(jnp.float32)
    o_ref[...] = (x + pe).astype(o_ref.dtype)


def _pe_mask_kernel(x_ref, pe_ref, m_ref, o_ref):
    # x_ref / o_ref: (Bt, TS, D);  pe_ref: (TS, D);  m_ref: (Bt, TS, 1) float32.
    x = x_ref[...].astype(jnp.float32)
    pe = pe_ref[...].astype(jnp.float32)[None, :, :]
    m = m_ref[...]                                  # lane-broadcast is cheap
    # x*m + pe*m == (x + pe) * m  -> one broadcast multiply instead of two.
    o_ref[...] = ((x + pe) * m).astype(o_ref.dtype)


# ----------------------- tile sizing -----------------------

def _round_down(v: int, unit: int) -> int:
    return max(unit, (v // unit) * unit)


def _sublane_unit(itemsize: int) -> int:
    # Native sublane packing: f32 -> 8, bf16 -> 16, int8/fp8 -> 32.
    return max(8, 32 // max(itemsize, 1))


def _choose_lane_width(n: int):
    """Largest multiple of 128 (<= 1024) that divides n, or None."""
    best = None
    upper = min(n, 1024)
    for lane in range(128, upper + 1, 128):
        if n % lane == 0:
            best = lane
    return best


def _choose_rows_and_batch(rows: int, batch: int, lane: int,
                           x_itemsize: int, pe_itemsize: int, unit: int):
    """No-mask 2-D-dense path: x/out double-buffered + pe double-buffered."""
    per_row = lane * (4 * x_itemsize + 2 * pe_itemsize)
    r_max = _BLOCK_BUDGET_BYTES // max(per_row, 1)
    if r_max >= rows:
        # Whole "row space" fits one tile: fold batch rows to fill the budget.
        pe_fixed = 2 * rows * lane * pe_itemsize
        per_b = 4 * rows * lane * x_itemsize
        bt = max(1, (_BLOCK_BUDGET_BYTES - pe_fixed) // max(per_b, 1))
        return rows, min(batch, bt)
    return min(rows, _round_down(r_max, unit)), 1


def _choose_seq_tile_and_batch(S: int, batch: int, D: int,
                               x_itemsize: int, pe_itemsize: int, unit: int):
    """Masked path: x/out + pe double-buffered, plus lane-padded mask buffers."""
    mask_row = 2 * 128 * 4       # (_, ts, 1) mask block lane-pads to 128, f32, double-buffered
    per_row = 4 * D * x_itemsize + 2 * D * pe_itemsize + mask_row
    t_max = _BLOCK_BUDGET_BYTES // max(per_row, 1)
    if t_max >= S:
        # Whole sequence fits one tile: fold batch rows to amortize per-step overhead.
        pe_fixed = 2 * S * D * pe_itemsize
        per_b = S * (4 * D * x_itemsize + mask_row)
        bt = max(1, (_BLOCK_BUDGET_BYTES - pe_fixed) // max(per_b, 1))
        return S, min(batch, bt)
    return min(S, _round_down(t_max, unit)), 1


# ----------------------- wrapper -----------------------

def positional_encoding_forward(x, pe_table, padding_mask=None, donate_x=False):
    """
    x:            (B, S, D) float32 or bf16
    pe_table:     (max_seq_length, D)
    padding_mask: optional (B, S) bool, True at padding positions.
    donate_x:     alias x to the output (only if the caller donates x).

    Eval-mode forward (dropout == identity).
    # TODO(synk): training-mode dropout (p=0.1) not implemented; forward matches .eval().
    """
    B, S, D = x.shape
    pe_slice = pe_table[:S, :]
    x_it = x.dtype.itemsize
    pe_it = pe_slice.dtype.itemsize
    unit = _sublane_unit(x_it)

    compiler_params = pltpu.CompilerParams(
        # Both axes are fully independent -> let v7x shard across its 2 TCs.
        dimension_semantics=("parallel", "parallel"),
        vmem_limit_bytes=_VMEM_LIMIT_BYTES,
    )
    io_alias = {0: 0} if donate_x else {}

    if padding_mask is None:
        N = S * D
        cost = pl.CostEstimate(flops=B * N, transcendentals=0,
                               bytes_accessed=2 * B * N * x_it + N * pe_it)
        lane = _choose_lane_width(N)
        if lane is not None:
            # 2-D-dense layout: fully-populated (8,128) vregs, unmasked vst.
            rows = N // lane
            R, Bt = _choose_rows_and_batch(rows, B, lane, x_it, pe_it, unit)
            x2 = x.reshape(B, rows, lane)            # metadata-only reshape
            pe2 = pe_slice.reshape(1, rows, lane)
            out = pl.pallas_call(
                _pe_nomask_kernel,
                out_shape=jax.ShapeDtypeStruct((B, rows, lane), x.dtype),
                grid_spec=pltpu.PrefetchScalarGridSpec(
                    num_scalar_prefetch=0,
                    # b is the fastest axis; PE block index depends only on r,
                    # so the PE tile stays resident (DMA skipped) across b.
                    grid=(pl.cdiv(rows, R), pl.cdiv(B, Bt)),
                    in_specs=[
                        pl.BlockSpec((Bt, R, lane), lambda r, b: (b, r, 0)),
                        pl.BlockSpec((1, R, lane), lambda r, b: (0, r, 0)),
                    ],
                    out_specs=pl.BlockSpec((Bt, R, lane), lambda r, b: (b, r, 0)),
                ),
                compiler_params=compiler_params,
                cost_estimate=cost,
                input_output_aliases=io_alias,
            )(x2, pe2)
            return out.reshape(B, S, D)

        # Fallback (S*D not a multiple of 128): flat lane axis, ragged last block.
        per_elem = 4 * x_it + 2 * pe_it
        tc_max = _BLOCK_BUDGET_BYTES // per_elem
        tc = N if tc_max >= N else _round_down(tc_max, 128)
        x_flat = x.reshape(B, 1, N)
        pe_flat = pe_slice.reshape(1, 1, N)
        out = pl.pallas_call(
            _pe_nomask_kernel,
            out_shape=jax.ShapeDtypeStruct((B, 1, N), x.dtype),
            grid_spec=pltpu.PrefetchScalarGridSpec(
                num_scalar_prefetch=0,
                grid=(pl.cdiv(N, tc), B),
                in_specs=[
                    pl.BlockSpec((1, 1, tc), lambda t, b: (b, 0, t)),
                    pl.BlockSpec((1, 1, tc), lambda t, b: (0, 0, t)),
                ],
                out_specs=pl.BlockSpec((1, 1, tc), lambda t, b: (b, 0, t)),
            ),
            compiler_params=compiler_params,
            cost_estimate=cost,
            input_output_aliases=io_alias,
        )(x_flat, pe_flat)
        return out.reshape(B, S, D)

    # Masked path: tile the sequence dimension; the mask is per-(b, s).
    ts, Bt = _choose_seq_tile_and_batch(S, B, D, x_it, pe_it, unit)
    # Precompute the float mask once (tiny (B, S, 1) f32 array; its HBM traffic
    # is negligible next to x/pe/out traffic).
    mask_f = ((1.0 - padding_mask.astype(jnp.float32)) + EPS)[:, :, None]
    cost = pl.CostEstimate(flops=2 * B * S * D, transcendentals=0,
                           bytes_accessed=2 * B * S * D * x_it + S * D * pe_it + B * S * 4)
    # TODO(synk): if D % 128 != 0 and D is large, padding D to the next multiple
    # of 128 (lane-dense stores) is worth the padding-traffic trade; not applied here.
    return pl.pallas_call(
        _pe_mask_kernel,
        out_shape=jax.ShapeDtypeStruct((B, S, D), x.dtype),
        grid_spec=pltpu.PrefetchScalarGridSpec(
            num_scalar_prefetch=0,
            grid=(pl.cdiv(S, ts), pl.cdiv(B, Bt)),    # b fastest; PE resident across b
            in_specs=[
                pl.BlockSpec((Bt, ts, D), lambda s, b: (b, s, 0)),
                pl.BlockSpec((ts, D), lambda s, b: (s, 0)),
                pl.BlockSpec((Bt, ts, 1), lambda s, b: (b, s, 0)),
            ],
            out_specs=pl.BlockSpec((Bt, ts, D), lambda s, b: (b, s, 0)),
        ),
        compiler_params=compiler_params,
        cost_estimate=cost,
        input_output_aliases=io_alias,
    )(x, pe_slice, mask_f)


# ----------------------- demo / check -----------------------

if __name__ == "__main__":
    B, S, D = 2, 8, 32
    MAX_LEN = 64

    key = jax.random.PRNGKey(0)
    kx, _ = jax.random.split(key)
    x = jax.random.normal(kx, (B, S, D), dtype=jnp.float32)
    # True = padding position (last two tokens of each sequence padded)
    padding_mask = jnp.broadcast_to(jnp.arange(S)[None, :] >= (S - 2), (B, S))

    pe_table = _make_pe_table(D, MAX_LEN)

    out = jax.block_until_ready(positional_encoding_forward(x, pe_table, padding_mask))

    # pure-JAX reference, faithful to the PyTorch op order (eval-mode dropout == identity)
    mask_ref = (1.0 - padding_mask.astype(jnp.float32))[:, :, None] + EPS
    ref = x * mask_ref + pe_table[None, :S, :] * mask_ref
    assert jnp.allclose(out, ref, atol=1e-5, rtol=1e-5), "mismatch vs reference (masked)"

    # also exercise the no-mask (lane-dense 2-D) path
    out2 = jax.block_until_ready(positional_encoding_forward(x, pe_table, None))
    ref2 = x + pe_table[None, :S, :]
    assert jnp.allclose(out2, ref2, atol=1e-6, rtol=1e-6), "mismatch vs reference (no mask)"

    print("KERNEL_OK")
</pallas_src>

<mosaic_0001>
module attributes {stable_mosaic.version = 11 : i64} {
  func.func @_pe_mask_kernel(%arg0: i32, %arg1: i32, %arg2: memref<2x8x32xf32, #tpu.memory_space<vmem>>, %arg3: memref<8x32xf32, #tpu.memory_space<vmem>>, %arg4: memref<2x8x1xf32, #tpu.memory_space<vmem>>, %arg5: memref<2x8x32xf32, #tpu.memory_space<vmem>>) attributes {dimension_semantics = [#tpu.dimension_semantics<parallel>, #tpu.dimension_semantics<parallel>], iteration_bounds = array<i64: 1, 1>, scalar_prefetch = 0 : i64, scratch_operands = 0 : i64, tpu.core_type = #tpu.core_type<tc>, window_params = [{transform_indices = @transform_0, window_bounds = array<i64: 2, 8, 32>}, {transform_indices = @transform_1, window_bounds = array<i64: 8, 32>}, {transform_indices = @transform_2, window_bounds = array<i64: 2, 8, 1>}, {transform_indices = @transform_3, window_bounds = array<i64: 2, 8, 32>}]} {
    %c0 = arith.constant 0 : index
    %c0_0 = arith.constant 0 : index
    %c0_1 = arith.constant 0 : index
    %0 = vector.load %arg2[%c0, %c0_0, %c0_1] : memref<2x8x32xf32, #tpu.memory_space<vmem>>, vector<2x8x32xf32>
    %c0_2 = arith.constant 0 : index
    %c0_3 = arith.constant 0 : index
    %1 = vector.load %arg3[%c0_2, %c0_3] : memref<8x32xf32, #tpu.memory_space<vmem>>, vector<8x32xf32>
    %2 = vector.shape_cast %1 : vector<8x32xf32> to vector<1x8x32xf32>
    %c0_4 = arith.constant 0 : index
    %c0_5 = arith.constant 0 : index
    %c0_6 = arith.constant 0 : index
    %3 = vector.load %arg4[%c0_4, %c0_5, %c0_6] : memref<2x8x1xf32, #tpu.memory_space<vmem>>, vector<2x8x1xf32>
    %4 = vector.broadcast %2 : vector<1x8x32xf32> to vector<2x8x32xf32>
    %5 = arith.addf %0, %4 : vector<2x8x32xf32>
    %6 = vector.broadcast %3 : vector<2x8x1xf32> to vector<2x8x32xf32>
    %7 = arith.mulf %5, %6 : vector<2x8x32xf32>
    %c0_7 = arith.constant 0 : index
    %c0_8 = arith.constant 0 : index
    %c0_9 = arith.constant 0 : index
    %8 = vector.load %arg5[%c0_7, %c0_8, %c0_9] : memref<2x8x32xf32, #tpu.memory_space<vmem>>, vector<2x8x32xf32>
    tpu.vector_store %arg5[%c0_7, %c0_8, %c0_9], %7 {strides = array<i32>} : memref<2x8x32xf32, #tpu.memory_space<vmem>>, vector<2x8x32xf32>,
    return
  }
  func.func @transform_0(%arg0: i32, %arg1: i32) -> (i32, i32, i32) {
    %c0_i32 = arith.constant 0 : i32
    %c0_i32_0 = arith.constant 0 : i32
    return %arg1, %arg0, %c0_i32 : i32, i32, i32
  }
  func.func @transform_1(%arg0: i32, %arg1: i32) -> (i32, i32) {
    %c0_i32 = arith.constant 0 : i32
    %c0_i32_0 = arith.constant 0 : i32
    return %arg0, %c0_i32 : i32, i32
  }
  func.func @transform_2(%arg0: i32, %arg1: i32) -> (i32, i32, i32) {
    %c0_i32 = arith.constant 0 : i32
    %c0_i32_0 = arith.constant 0 : i32
    return %arg1, %arg0, %c0_i32 : i32, i32, i32
  }
  func.func @transform_3(%arg0: i32, %arg1: i32) -> (i32, i32, i32) {
    %c0_i32 = arith.constant 0 : i32
    %c0_i32_0 = arith.constant 0 : i32
    return %arg1, %arg0, %c0_i32 : i32, i32, i32
  }
}

</mosaic_0001>

<bundles_post_ra>
// kernel: tpu_custom_call.1
= control target key start
LH: loop header
LB: loop body
LE: loop exit
PB: predicated region body
PF: predicated region fallthrough
CT: control target
= control target key end

     0   :  { %8 = vsyncpa [#allocation3], 0  ;;  %s159_s0 = inlined_call_operand.vmem [shape: f32[2,8,32], index: 0, kind: input, shape index: {}]   ;;  %s160_s1 = inlined_call_operand.hbm [shape: f32[8,32], index: 1, kind: input, shape index: {}]   ;;  %s161_s2 = inlined_call_operand.vmem [shape: f32[2,8,1], index: 2, kind: input, shape index: {}]   ;;  %s162_s3 = inlined_call_operand.hbm [shape: f32[2,8,32], index: 3, kind: output, shape index: {}]  }
   0x1   :  { %9 = vsyncpa [#allocation4], 0  ;;  %s116_s12 = smov [#allocation2]  }
   0x2   :  { %s18_s13 = sshll.u32 %s116_s12, 4  ;;  %s19_s13 = int_to_ptr.vmem [resolvable:$true] %s18_s13 }
   0x3   :  { %s80_s14 = scalar_lea.vmem %s19_s13, 128  ;;  %p85_p1 = scmp.lt.s32.totalorder %s19_s13, %s19_s13 }
   0x4   :  { %p81_p0 = scmp.ne.s32.totalorder %s19_s13, %s80_s14  ;;  %p86_p2 = scmp.lt.s32.totalorder %s80_s14, %s80_s14 }
   0x6   :  { %p87_p3 = por %p86_p2, %p85_p1 }
   0x8   :  { %p88_p4 = pnand %p87_p3, %p81_p0 }
   0xa   :  { %91 = shalt.err (!%p88_p4)
}
   0xb   :  { %21 = dma.hbm_to_vmem [thread:$0]  %s160_s1, 128, %s19_s13, [#allocation3]  }
   0xc   :  { %112 = dma.done.wait [#allocation3], 128  }
   0xd   :  { %113 = vsyncadd [#allocation3], 4294967168  ;;  %v117_v0 = vmov 0   ;;  %v30_v1 = vld [vmem:[%s161_s2] sm:$0xff]  ;;  %v31_v2 = vld [vmem:[%s161_s2 + $0x8] sm:$0xff]  ;;  %vm46_vm0 = vcmask 261120  }
   0xe   :  { %71 = vset.pattern.permute.xlu0 %v117_v0  ;;  %v27_v3 = vld [vmem:[%s159_s0] sm:$0xff]  ;;  %v28_v6 = vld [vmem:[%s159_s0 + $0x8] sm:$0xff]  ;;  %s118_s24 = smov [#allocation5]  }
   0xf   :  { %36 = vperm.xlu0 %71, %v30_v1   ;;  %v29_v4 = vld [vmem:[#allocation2] sm:$0xff]  ;;  %s54_s25 = sshll.u32 %s118_s24, 4  ;;  %s55_s25 = int_to_ptr.vmem [resolvable:$true] %s54_s25 }
  0x10   :  { %v32_v5 = vadd.f32 %v29_v4, %v27_v3  ;;  %v33_v9 = vadd.f32 %v29_v4, %v28_v6  ;;  %s92_s2 = scalar_lea.vmem %s55_s25, 256  ;;  %p97_p6 = scmp.lt.s32.totalorder %s55_s25, %s55_s25 }
  0x11   :  { %p93_p5 = scmp.ne.s32.totalorder %s55_s25, %s92_s2  ;;  %p98_p7 = scmp.lt.s32.totalorder %s92_s2, %s92_s2 }
  0x13   :  { %41 = vperm.xlu0 %71, %v31_v2   ;;  %p99_p8 = por %p98_p7, %p97_p6 }
  0x15   :  { %p100_p9 = pnand %p99_p8, %p93_p5 }
  0x8a   :  { %v37_v7 = vpop.permute.xlu0 %36 }
  0x8b   :  { %v44_v8 = vmul.f32 %v37_v7, %v32_v5 }
  0x8d   :  { %47 = vst.msk [vmem:[#allocation5] sm:$0xff] %vm46_vm0, %v44_v8 }
  0x8e   :  { %v42_v10 = vpop.permute.xlu0 %41 }
  0x8f   :  { %v45_v11 = vmul.f32 %v42_v10, %v33_v9 }
  0x91   :  { %48 = vst.msk [vmem:[#allocation5 + $0x8] sm:$0xff] %vm46_vm0, %v45_v11 }
  0x92   :  { %103 = shalt.err (!%p100_p9)
}
  0x93   :  { %s119_s26 = smov 128   ;;  %s120_s0 = smov 8  }
  0x94   :  { %60 = dma.vmem_to_hbm [thread:$0]  %s55_s25, 256, %s162_s3, [#allocation4], %s119_s26, %s119_s26, %s120_s0  }
  0x95   :  { %114 = dma.done.wait [#allocation4], 256  }
  0x96   :  { %115 = vsyncadd [#allocation4], 4294967040 }
  0x97   :  { %64 = vsyncpa [#allocation3], 1 }
  0x98   :  { %65 = vsyncpa [#allocation4], 1 }

</bundles_post_ra>
